<compile_context>
chip_gen: v7x
topology: tpu7x:2x2x1
jax: 0.10.0
libtpu: 0.0.40
codegen_flags: <defaults>
</compile_context>

<pallas_src>
import functools
import math

import jax
import jax.numpy as jnp
from jax.experimental import pallas as pl
from jax.experimental.pallas import tpu as pltpu

# ----------------------------- configuration -------------------------------
BS, SEQ = 2, 8
NUM_JOINTS = 22
MOTION_DIM = NUM_JOINTS * 6          # body_motion feature dim = 132
SPARSE_DIM = 3 * 18                  # sparse tracking feature dim = 54
LATENT_DIM = 32                      # VAE latent dim
COND_INTER_DIM = 64
COND_DIM = 32
TEMB_DIM = 32                        # denoiser timestep embedding dim
TIME_COND_DIM = 32                   # student.time_cond_dim (w-embedding)
HIDDEN_DIM = 64
NUM_TRAIN_TIMESTEPS = 1000
NUM_DDIM_TIMESTEPS = 50              # train_cfg.NUM_DDIM_TIMESTEPS
W_MAX, W_MIN = 15.0, 5.0
SIGMA_DATA = 0.5
TIMESTEP_SCALING = 10.0

# ------------------ packed activation slab column layout --------------------
A_MOT = 0                            # motion[:, :128]                      (128)
A_SPX = 128                          # [sparse(54) | motion[:,128:](4) | 0]  (64)
A_NOISE = 192                        # gaussian noise                        (32)
A_SCAL = 224                         # 9 per-row scalars, zero padded        (32)
ACT_COLS = 256

# -------------------- packed weight slab row layout -------------------------
R_VAE = 0        # (192, 32)  rows: [motion 0:128 ; sparse ; motion 128:132 ; 0]
R_CE1 = 192      # (64, 64)   rows 54:64 are zero (nullifies motion-tail lanes)
R_CE2 = 256      # (64, 32)
R_W1X = 320      # (32, 64)
R_W1C = 352      # (32, 64)
R_W1TW = 384     # (64, 64)   [w1_temb ; w1_wemb]
R_W2 = 448       # (64, 32)
WSLAB_ROWS = 512
WSLAB_COLS = 128

# ------------------------------ consts slab rows -----------------------------
CR_BVAE, CR_BCE1, CR_BCE2, CR_B1, CR_B2, CR_UNCOND = range(6)
CONST_ROWS, CONST_COLS = 8, 128


# ----------------------------- Pallas kernel -------------------------------
def _vspec(shape):
    nd = len(shape)
    return pl.BlockSpec(shape, lambda i, _nd=nd: (0,) * _nd)


def _fused_kernel(act_ref, twemb_ref, w_ref, c_ref, out_ref, *, n):
    f32 = jnp.float32

    def mm(a, w):
        return jnp.dot(a, w, preferred_element_type=f32)

    def gelu(x):
        return jax.nn.gelu(x, approximate=True)

    A = act_ref[...]                                     # (n, 256) f32
    C = c_ref[...]                                       # (8, 128) f32

    motion_sparse = A[:, A_MOT:A_SPX + 64]               # (n, 192) VAE input
    sparse_pad = A[:, A_SPX:A_SPX + 64]                  # (n, 64)  cond-enc input
    noise = A[:, A_NOISE:A_NOISE + LATENT_DIM]           # (n, 32)

    alpha_t = A[:, A_SCAL + 0:A_SCAL + 1]                # sqrt(acp[start_t])
    sigma_t = A[:, A_SCAL + 1:A_SCAL + 2]                # sqrt(1 - acp[start_t])
    w_cfg = A[:, A_SCAL + 2:A_SCAL + 3]                  # guidance weight
    acp_prev_sqrt = A[:, A_SCAL + 3:A_SCAL + 4]          # sqrt(acp_prev)
    dir_coef = A[:, A_SCAL + 4:A_SCAL + 5]               # sqrt(1 - acp_prev)
    c_skip_s = A[:, A_SCAL + 5:A_SCAL + 6]
    c_out_s = A[:, A_SCAL + 6:A_SCAL + 7]
    c_skip = A[:, A_SCAL + 7:A_SCAL + 8]
    c_out = A[:, A_SCAL + 8:A_SCAL + 9]

    b_vae = C[CR_BVAE:CR_BVAE + 1, :LATENT_DIM]
    b_ce1 = C[CR_BCE1:CR_BCE1 + 1, :COND_INTER_DIM]
    b_ce2 = C[CR_BCE2:CR_BCE2 + 1, :COND_DIM]
    b1 = C[CR_B1:CR_B1 + 1, :HIDDEN_DIM]
    b2 = C[CR_B2:CR_B2 + 1, :LATENT_DIM]
    uncond_proj = C[CR_UNCOND:CR_UNCOND + 1, :HIDDEN_DIM]

    # ---------------- body_vae.encode: single K=192 matmul ------------------
    gt_latent = mm(motion_sparse,
                   w_ref[R_VAE:R_VAE + 192, :LATENT_DIM]) + b_vae      # (n, 32)

    # ---------------- cond encoder chain ------------------------------------
    cond_inter = gelu(mm(sparse_pad,
                         w_ref[R_CE1:R_CE1 + 64, :COND_INTER_DIM]) + b_ce1)
    cond = mm(cond_inter, w_ref[R_CE2:R_CE2 + 64, :COND_DIM]) + b_ce2  # (n, 32)

    # ---------------- scheduler.add_noise (fused elementwise) ---------------
    noisy = alpha_t * gt_latent + sigma_t * noise                      # (n, 32)

    # --------- merged timestep / guidance embedding projection --------------
    tw = mm(twemb_ref[...], w_ref[R_W1TW:R_W1TW + 64, :HIDDEN_DIM])    # (3n, 64)
    tsw_proj = tw[0:n, :]          # temb_start + wemb   (student)
    tpw_proj = tw[n:2 * n, :]      # temb_prev  + wemb   (target)
    ts_proj = tw[2 * n:3 * n, :]   # temb_start only     (teacher: no timestep_cond)

    # ---------------- denoiser l1: split-K partial projections --------------
    # Single accumulation expressions so v7x can keep partial products in MRB.
    base = mm(noisy, w_ref[R_W1X:R_W1X + 32, :HIDDEN_DIM]) + b1        # (n, 64)
    cond_proj = mm(cond, w_ref[R_W1C:R_W1C + 32, :HIDDEN_DIM])         # (n, 64)

    h_student = gelu(base + tsw_proj + cond_proj)
    h_tcond = gelu(base + ts_proj + cond_proj)
    h_tuncond = gelu(base + ts_proj + uncond_proj)

    # ------ the three same-input denoiser passes: one stacked l2 matmul -----
    h_stack = jnp.concatenate([h_student, h_tcond, h_tuncond], axis=0)  # (3n, 64)
    out_stack = mm(h_stack, w_ref[R_W2:R_W2 + 64, :LATENT_DIM]) + b2    # (3n, 32)
    pred_x_0 = out_stack[0:n, :]
    cond_out = out_stack[n:2 * n, :]
    uncond_out = out_stack[2 * n:3 * n, :]

    # -------- CFG combine + epsilon prediction + DDIM step (fused) ----------
    rcp_sigma = 1.0 / sigma_t          # exact: 1/sigma amplifies rounding ~100x
    cond_noise = (noisy - alpha_t * cond_out) * rcp_sigma
    uncond_noise = (noisy - alpha_t * uncond_out) * rcp_sigma
    pred_x0_cfg = cond_out + w_cfg * (cond_out - uncond_out)
    pred_noise = cond_noise + w_cfg * (cond_noise - uncond_noise)
    x_prev = acp_prev_sqrt * pred_x0_cfg + dir_coef * pred_noise        # (n, 32)

    # ---------------- target denoiser pass (depends on x_prev) --------------
    h_target = gelu(mm(x_prev, w_ref[R_W1X:R_W1X + 32, :HIDDEN_DIM]) + b1
                    + tpw_proj + cond_proj)
    target_pred = mm(h_target, w_ref[R_W2:R_W2 + 64, :LATENT_DIM]) + b2

    # ---------------- boundary-condition combine (single packed output) -----
    out_ref[:, 0:LATENT_DIM] = c_skip_s * noisy + c_out_s * pred_x_0
    out_ref[:, LATENT_DIM:2 * LATENT_DIM] = c_skip * x_prev + c_out * target_pred


def fused_distill_forward(params, act, twemb):
    n = act.shape[0]
    inputs = (act, twemb, params["wslab"], params["consts"])
    return pl.pallas_call(
        functools.partial(_fused_kernel, n=n),
        grid=(1,),
        in_specs=[_vspec(x.shape) for x in inputs],
        out_specs=_vspec((n, 2 * LATENT_DIM)),
        out_shape=jax.ShapeDtypeStruct((n, 2 * LATENT_DIM), jnp.float32),
        compiler_params=pltpu.CompilerParams(
            dimension_semantics=("arbitrary",)),   # tiny serial chain; no TC split
    )(*inputs)


# --------------------------- host-side glue ---------------------------------
def sinusoidal_embedding(t, dim):
    half = dim // 2
    freqs = jnp.exp(-math.log(10000.0)
                    * jnp.arange(half, dtype=jnp.float32) / half)
    args = t.astype(jnp.float32)[:, None] * freqs[None, :]
    return jnp.concatenate([jnp.cos(args), jnp.sin(args)], axis=-1)


def get_guidance_scale_embedding(w, embedding_dim):
    # NOTE: embeds w * 1000 (as in the previous reference implementation);
    # diffusers-style LCM code sometimes embeds (w - 1) * 1000.
    w = w.astype(jnp.float32) * 1000.0
    half_dim = embedding_dim // 2
    emb = math.log(10000.0) / (half_dim - 1)
    emb = jnp.exp(jnp.arange(half_dim, dtype=jnp.float32) * -emb)
    emb = w[:, None] * emb[None, :]
    return jnp.concatenate([jnp.sin(emb), jnp.cos(emb)], axis=1)


def scale_boundary_cond(timestep):
    t = timestep.astype(jnp.float32) * TIMESTEP_SCALING
    c_skip = SIGMA_DATA ** 2 / (t ** 2 + SIGMA_DATA ** 2)
    c_out = t / jnp.sqrt(t ** 2 + SIGMA_DATA ** 2)
    return c_skip, c_out


def make_schedule():
    # DDPM linear beta schedule + DDIMSolver tables
    betas = jnp.linspace(1e-4, 0.02, NUM_TRAIN_TIMESTEPS, dtype=jnp.float32)
    alphas_cumprod = jnp.cumprod(1.0 - betas)
    step_ratio = NUM_TRAIN_TIMESTEPS // NUM_DDIM_TIMESTEPS
    ddim_timesteps = (jnp.arange(1, NUM_DDIM_TIMESTEPS + 1) * step_ratio) - 1
    ddim_alpha_cumprods_prev = jnp.concatenate(
        [alphas_cumprod[:1], alphas_cumprod[ddim_timesteps[:-1]]])
    return {
        "alpha_schedule": jnp.sqrt(alphas_cumprod),           # sqrt(acp)
        "sigma_schedule": jnp.sqrt(1.0 - alphas_cumprod),     # sqrt(1-acp)
        "ddim_timesteps": ddim_timesteps.astype(jnp.int32),
        "ddim_alpha_cumprods_prev": ddim_alpha_cumprods_prev,
    }


def init_params(key):
    ks = jax.random.split(key, 5)

    def lin(k, fan_in, fan_out):
        kw, kb = jax.random.split(k)
        w = jax.random.normal(kw, (fan_in, fan_out), jnp.float32) * 0.02
        b = jax.random.normal(kb, (fan_out,), jnp.float32) * 0.01
        return w, b

    w_vae, b_vae = lin(ks[0], MOTION_DIM + SPARSE_DIM, LATENT_DIM)   # (186, 32)
    w_ce1, b_ce1 = lin(ks[1], SPARSE_DIM, COND_INTER_DIM)            # (54, 64)
    w_ce2, b_ce2 = lin(ks[2], COND_INTER_DIM, COND_DIM)              # (64, 32)
    w1, b1 = lin(ks[3], LATENT_DIM + TEMB_DIM + COND_DIM + TIME_COND_DIM,
                 HIDDEN_DIM)                                         # (128, 64)
    w2, b2 = lin(ks[4], HIDDEN_DIM, LATENT_DIM)                      # (64, 32)

    o0 = LATENT_DIM
    o1 = o0 + TEMB_DIM
    o2 = o1 + COND_DIM
    w1_x, w1_t, w1_c, w1_w = w1[0:o0], w1[o0:o1], w1[o1:o2], w1[o2:]

    # VAE weight rows reordered to match the activation slab; K split at 128 so
    # the motion matmul is a single unmasked K pass on v5e's 128-wide MXU.
    w_vae_r = jnp.concatenate([
        w_vae[:128],                             # motion features 0:128
        w_vae[MOTION_DIM:],                      # sparse features
        w_vae[128:MOTION_DIM],                   # motion tail features 128:132
        jnp.zeros((6, LATENT_DIM), jnp.float32)], axis=0)             # (192, 32)
    # cond-encoder l1 padded with zero rows so the slab's motion-tail/zero lanes
    # contribute nothing to the conditioning.
    w_ce1_p = jnp.concatenate(
        [w_ce1, jnp.zeros((64 - SPARSE_DIM, COND_INTER_DIM), jnp.float32)], axis=0)
    w1_tw = jnp.concatenate([w1_t, w1_w], axis=0)                     # (64, 64)

    def pad_lanes(w):
        return jnp.pad(w, ((0, 0), (0, WSLAB_COLS - w.shape[1])))

    wslab = jnp.concatenate([
        pad_lanes(w_vae_r),     # R_VAE
        pad_lanes(w_ce1_p),     # R_CE1
        pad_lanes(w_ce2),       # R_CE2
        pad_lanes(w1_x),        # R_W1X
        pad_lanes(w1_c),        # R_W1C
        pad_lanes(w1_tw),       # R_W1TW
        pad_lanes(w2),          # R_W2
    ], axis=0).astype(jnp.float32)
    assert wslab.shape == (WSLAB_ROWS, WSLAB_COLS)

    # Frozen cond-encoder uncond branch, constant-folded at init:
    #   cond_encoder(0) == gelu(b_ce1) -> cond_encoder2 -> @ w1_c.
    # TODO(synk): this fold only holds for the synthesized bias+gelu 2-layer cond
    # encoder; a config-defined encoder with norm layers needs the real sub-net.
    uncond_cond = (jax.nn.gelu(b_ce1[None, :], approximate=True) @ w_ce2
                   + b_ce2[None, :])                                  # (1, 32)
    uncond_proj = uncond_cond @ w1_c                                  # (1, 64)

    def crow(v):
        v = v.reshape(1, -1)
        return jnp.pad(v, ((0, 0), (0, CONST_COLS - v.shape[1])))

    consts = jnp.concatenate([
        crow(b_vae), crow(b_ce1), crow(b_ce2), crow(b1), crow(b2),
        crow(uncond_proj),
        jnp.zeros((CONST_ROWS - 6, CONST_COLS), jnp.float32)], axis=0)
    assert consts.shape == (CONST_ROWS, CONST_COLS)

    return {"wslab": wslab, "consts": consts.astype(jnp.float32)}


# ------------------------------- forward -----------------------------------
def forward(params, schedule, batch, key):
    body_motion, sparse = batch                    # (bs,seq,132), (bs,seq,54)
    bs, seq = body_motion.shape[:2]
    n = bs * seq

    motion2 = body_motion.reshape(n, MOTION_DIM)
    sparse2 = sparse.reshape(n, SPARSE_DIM)

    # ---------------- _universal_process (scalar-sized host/XLA work) -------
    k_noise, k_idx, k_w = jax.random.split(key, 3)
    noise = jax.random.normal(k_noise, (n, LATENT_DIM), jnp.float32)
    topk = NUM_TRAIN_TIMESTEPS // NUM_DDIM_TIMESTEPS
    index = jax.random.randint(k_idx, (bs,), 0, NUM_DDIM_TIMESTEPS)
    start_timesteps = schedule["ddim_timesteps"][index]
    timesteps = jnp.maximum(start_timesteps - topk, 0)

    c_skip_start, c_out_start = scale_boundary_cond(start_timesteps)
    c_skip, c_out = scale_boundary_cond(timesteps)

    alpha_t = schedule["alpha_schedule"][start_timesteps]
    sigma_t = schedule["sigma_schedule"][start_timesteps]
    acp_prev = schedule["ddim_alpha_cumprods_prev"][index]

    w = (W_MAX - W_MIN) * jax.random.uniform(k_w, (bs,)) + W_MIN
    w_embedding = get_guidance_scale_embedding(w, TIME_COND_DIM)   # (bs, 32)
    temb_start = sinusoidal_embedding(start_timesteps, TEMB_DIM)   # (bs, 32)
    temb_prev = sinusoidal_embedding(timesteps, TEMB_DIM)          # (bs, 32)

    # Pack the 9 per-batch scalars into a per-row block (n, 32).
    scal_b = jnp.stack(
        [alpha_t, sigma_t, w, jnp.sqrt(acp_prev), jnp.sqrt(1.0 - acp_prev),
         c_skip_start, c_out_start, c_skip, c_out], axis=-1).astype(jnp.float32)
    scal_rows = jnp.repeat(scal_b, seq, axis=0)                    # (n, 9)
    scal_pad = jnp.pad(scal_rows, ((0, 0), (0, 32 - scal_rows.shape[1])))

    # One f32 activation slab (single prologue DMA):
    #   [motion[:, :128] | sparse | motion[:, 128:] | 0 | noise | scalars]
    act = jnp.concatenate(
        [motion2[:, :128], sparse2, motion2[:, 128:],
         jnp.zeros((n, 6), jnp.float32), noise, scal_pad], axis=1)  # (n, 256)
    assert act.shape[1] == ACT_COLS

    # Pre-broadcast timestep / guidance embeddings (host side) and stack so the
    # kernel only needs ONE (3n, 64) projection matmul:
    #   rows 0:n   = [temb_start | wemb]   (student)
    #   rows n:2n  = [temb_prev  | wemb]   (target)
    #   rows 2n:3n = [temb_start | 0]      (teacher: no timestep_cond)
    temb_s_b = jnp.repeat(temb_start, seq, axis=0)
    temb_p_b = jnp.repeat(temb_prev, seq, axis=0)
    wemb_b = jnp.repeat(w_embedding, seq, axis=0)
    twemb = jnp.concatenate([
        jnp.concatenate([temb_s_b, wemb_b], axis=1),
        jnp.concatenate([temb_p_b, wemb_b], axis=1),
        jnp.concatenate([temb_s_b, jnp.zeros_like(wemb_b)], axis=1)], axis=0)

    out = fused_distill_forward(params, act, twemb)                # (n, 64)
    model_pred = out[:, :LATENT_DIM].reshape(bs, seq, LATENT_DIM)
    target = out[:, LATENT_DIM:].reshape(bs, seq, LATENT_DIM)
    return model_pred.astype(jnp.float32), target.astype(jnp.float32)


# --------------------------------- main -------------------------------------
if __name__ == "__main__":
    root = jax.random.PRNGKey(0)
    kp, kb, ks, kf = jax.random.split(root, 4)

    params = init_params(kp)
    schedule = make_schedule()

    body_motion = jax.random.normal(kb, (BS, SEQ, MOTION_DIM), jnp.float32)
    sparse = jax.random.normal(ks, (BS, SEQ, SPARSE_DIM), jnp.float32)

    fwd = jax.jit(forward)
    model_pred, target = fwd(params, schedule, (body_motion, sparse), kf)
    jax.block_until_ready((model_pred, target))

    assert model_pred.shape == (BS, SEQ, LATENT_DIM)
    assert target.shape == (BS, SEQ, LATENT_DIM)
    assert bool(jnp.all(jnp.isfinite(model_pred))) and bool(jnp.all(jnp.isfinite(target)))
    print("KERNEL_OK")
</pallas_src>

<mosaic_0001>
module attributes {stable_mosaic.version = 11 : i64} {
  func.func @_fused_kernel(%arg0: i32, %arg1: memref<16x256xf32, #tpu.memory_space<vmem>>, %arg2: memref<48x64xf32, #tpu.memory_space<vmem>>, %arg3: memref<512x128xf32, #tpu.memory_space<vmem>>, %arg4: memref<8x128xf32, #tpu.memory_space<vmem>>, %arg5: memref<16x64xf32, #tpu.memory_space<vmem>>) attributes {dimension_semantics = [#tpu.dimension_semantics<arbitrary>], iteration_bounds = array<i64: 1>, scalar_prefetch = 0 : i64, scratch_operands = 0 : i64, tpu.core_type = #tpu.core_type<tc>, window_params = [{pipeline_mode = #tpu.pipeline_mode<synchronous>, transform_indices = @transform_0, window_bounds = array<i64: 16, 256>}, {pipeline_mode = #tpu.pipeline_mode<synchronous>, transform_indices = @transform_1, window_bounds = array<i64: 48, 64>}, {pipeline_mode = #tpu.pipeline_mode<synchronous>, transform_indices = @transform_2, window_bounds = array<i64: 512, 128>}, {pipeline_mode = #tpu.pipeline_mode<synchronous>, transform_indices = @transform_3, window_bounds = array<i64: 8, 128>}, {pipeline_mode = #tpu.pipeline_mode<synchronous>, transform_indices = @transform_4, window_bounds = array<i64: 16, 64>}]} {
    %c0 = arith.constant 0 : index
    %c0_0 = arith.constant 0 : index
    %0 = vector.load %arg1[%c0, %c0_0] : memref<16x256xf32, #tpu.memory_space<vmem>>, vector<16x256xf32>
    %c0_1 = arith.constant 0 : index
    %c0_2 = arith.constant 0 : index
    %1 = vector.load %arg4[%c0_1, %c0_2] : memref<8x128xf32, #tpu.memory_space<vmem>>, vector<8x128xf32>
    %2 = vector.extract_strided_slice %0 {offsets = [0, 0], sizes = [16, 192], strides = [1, 1]} : vector<16x256xf32> to vector<16x192xf32>
    %3 = vector.extract_strided_slice %0 {offsets = [0, 128], sizes = [16, 64], strides = [1, 1]} : vector<16x256xf32> to vector<16x64xf32>
    %4 = vector.extract_strided_slice %0 {offsets = [0, 192], sizes = [16, 32], strides = [1, 1]} : vector<16x256xf32> to vector<16x32xf32>
    %5 = vector.extract_strided_slice %0 {offsets = [0, 224], sizes = [16, 1], strides = [1, 1]} : vector<16x256xf32> to vector<16x1xf32>
    %6 = vector.extract_strided_slice %0 {offsets = [0, 225], sizes = [16, 1], strides = [1, 1]} : vector<16x256xf32> to vector<16x1xf32>
    %7 = vector.extract_strided_slice %0 {offsets = [0, 226], sizes = [16, 1], strides = [1, 1]} : vector<16x256xf32> to vector<16x1xf32>
    %8 = vector.extract_strided_slice %0 {offsets = [0, 227], sizes = [16, 1], strides = [1, 1]} : vector<16x256xf32> to vector<16x1xf32>
    %9 = vector.extract_strided_slice %0 {offsets = [0, 228], sizes = [16, 1], strides = [1, 1]} : vector<16x256xf32> to vector<16x1xf32>
    %10 = vector.extract_strided_slice %0 {offsets = [0, 229], sizes = [16, 1], strides = [1, 1]} : vector<16x256xf32> to vector<16x1xf32>
    %11 = vector.extract_strided_slice %0 {offsets = [0, 230], sizes = [16, 1], strides = [1, 1]} : vector<16x256xf32> to vector<16x1xf32>
    %12 = vector.extract_strided_slice %0 {offsets = [0, 231], sizes = [16, 1], strides = [1, 1]} : vector<16x256xf32> to vector<16x1xf32>
    %13 = vector.extract_strided_slice %0 {offsets = [0, 232], sizes = [16, 1], strides = [1, 1]} : vector<16x256xf32> to vector<16x1xf32>
    %14 = vector.extract_strided_slice %1 {offsets = [0, 0], sizes = [1, 32], strides = [1, 1]} : vector<8x128xf32> to vector<1x32xf32>
    %15 = vector.extract_strided_slice %1 {offsets = [1, 0], sizes = [1, 64], strides = [1, 1]} : vector<8x128xf32> to vector<1x64xf32>
    %16 = vector.extract_strided_slice %1 {offsets = [2, 0], sizes = [1, 32], strides = [1, 1]} : vector<8x128xf32> to vector<1x32xf32>
    %17 = vector.extract_strided_slice %1 {offsets = [3, 0], sizes = [1, 64], strides = [1, 1]} : vector<8x128xf32> to vector<1x64xf32>
    %18 = vector.extract_strided_slice %1 {offsets = [4, 0], sizes = [1, 32], strides = [1, 1]} : vector<8x128xf32> to vector<1x32xf32>
    %19 = vector.extract_strided_slice %1 {offsets = [5, 0], sizes = [1, 64], strides = [1, 1]} : vector<8x128xf32> to vector<1x64xf32>
    %c0_3 = arith.constant 0 : index
    %c0_4 = arith.constant 0 : index
    %20 = vector.load %arg3[%c0_3, %c0_4] : memref<512x128xf32, #tpu.memory_space<vmem>>, vector<192x32xf32>
    %cst = arith.constant dense<0.000000e+00> : vector<16x32xf32>
    %21 = tpu.matmul %2, %20, %cst {dimension_numbers = #tpu.dot_dimension_numbers<[1], [0], [0], [1], [0, 0, 1, 1], [], []>} : vector<16x192xf32>, vector<192x32xf32>, vector<16x32xf32> -> vector<16x32xf32>
    %22 = vector.broadcast %14 : vector<1x32xf32> to vector<16x32xf32>
    %23 = arith.addf %21, %22 : vector<16x32xf32>
    %c192 = arith.constant 192 : index
    %c0_5 = arith.constant 0 : index
    %24 = vector.load %arg3[%c192, %c0_5] : memref<512x128xf32, #tpu.memory_space<vmem>>, vector<64x64xf32>
    %cst_6 = arith.constant dense<0.000000e+00> : vector<16x64xf32>
    %25 = tpu.matmul %3, %24, %cst_6 {dimension_numbers = #tpu.dot_dimension_numbers<[1], [0], [0], [1], [0, 0, 1, 1], [], []>} : vector<16x64xf32>, vector<64x64xf32>, vector<16x64xf32> -> vector<16x64xf32>
    %26 = vector.broadcast %15 : vector<1x64xf32> to vector<16x64xf32>
    %27 = arith.addf %25, %26 : vector<16x64xf32>
    %28 = arith.mulf %27, %27 : vector<16x64xf32>
    %29 = arith.mulf %27, %28 : vector<16x64xf32>
    %cst_7 = arith.constant 4.471500e-02 : f32
    %30 = vector.broadcast %cst_7 : f32 to vector<16x64xf32>
    %31 = arith.mulf %30, %29 : vector<16x64xf32>
    %32 = arith.addf %27, %31 : vector<16x64xf32>
    %cst_8 = arith.constant 0.797884583 : f32
    %33 = vector.broadcast %cst_8 : f32 to vector<16x64xf32>
    %34 = arith.mulf %33, %32 : vector<16x64xf32>
    %35 = math.tanh %34 : vector<16x64xf32>
    %cst_9 = arith.constant 1.000000e+00 : f32
    %36 = vector.broadcast %cst_9 : f32 to vector<16x64xf32>
    %37 = arith.addf %36, %35 : vector<16x64xf32>
    %cst_10 = arith.constant 5.000000e-01 : f32
    %38 = vector.broadcast %cst_10 : f32 to vector<16x64xf32>
    %39 = arith.mulf %38, %37 : vector<16x64xf32>
    %40 = arith.mulf %27, %39 : vector<16x64xf32>
    %c256 = arith.constant 256 : index
    %c0_11 = arith.constant 0 : index
    %41 = vector.load %arg3[%c256, %c0_11] : memref<512x128xf32, #tpu.memory_space<vmem>>, vector<64x32xf32>
    %cst_12 = arith.constant dense<0.000000e+00> : vector<16x32xf32>
    %42 = tpu.matmul %40, %41, %cst_12 {dimension_numbers = #tpu.dot_dimension_numbers<[1], [0], [0], [1], [0, 0, 1, 1], [], []>} : vector<16x64xf32>, vector<64x32xf32>, vector<16x32xf32> -> vector<16x32xf32>
    %43 = vector.broadcast %16 : vector<1x32xf32> to vector<16x32xf32>
    %44 = arith.addf %42, %43 : vector<16x32xf32>
    %45 = vector.broadcast %5 : vector<16x1xf32> to vector<16x32xf32>
    %46 = arith.mulf %45, %23 : vector<16x32xf32>
    %47 = vector.broadcast %6 : vector<16x1xf32> to vector<16x32xf32>
    %48 = arith.mulf %47, %4 : vector<16x32xf32>
    %49 = arith.addf %46, %48 : vector<16x32xf32>
    %c0_13 = arith.constant 0 : index
    %c0_14 = arith.constant 0 : index
    %50 = vector.load %arg2[%c0_13, %c0_14] : memref<48x64xf32, #tpu.memory_space<vmem>>, vector<48x64xf32>
    %c384 = arith.constant 384 : index
    %c0_15 = arith.constant 0 : index
    %51 = vector.load %arg3[%c384, %c0_15] : memref<512x128xf32, #tpu.memory_space<vmem>>, vector<64x64xf32>
    %cst_16 = arith.constant dense<0.000000e+00> : vector<48x64xf32>
    %52 = tpu.matmul %50, %51, %cst_16 {dimension_numbers = #tpu.dot_dimension_numbers<[1], [0], [0], [1], [0, 0, 1, 1], [], []>} : vector<48x64xf32>, vector<64x64xf32>, vector<48x64xf32> -> vector<48x64xf32>
    %53 = vector.extract_strided_slice %52 {offsets = [0, 0], sizes = [16, 64], strides = [1, 1]} : vector<48x64xf32> to vector<16x64xf32>
    %54 = vector.extract_strided_slice %52 {offsets = [16, 0], sizes = [16, 64], strides = [1, 1]} : vector<48x64xf32> to vector<16x64xf32>
    %55 = vector.extract_strided_slice %52 {offsets = [32, 0], sizes = [16, 64], strides = [1, 1]} : vector<48x64xf32> to vector<16x64xf32>
    %c320 = arith.constant 320 : index
    %c0_17 = arith.constant 0 : index
    %56 = vector.load %arg3[%c320, %c0_17] : memref<512x128xf32, #tpu.memory_space<vmem>>, vector<32x64xf32>
    %cst_18 = arith.constant dense<0.000000e+00> : vector<16x64xf32>
    %57 = tpu.matmul %49, %56, %cst_18 {dimension_numbers = #tpu.dot_dimension_numbers<[1], [0], [0], [1], [0, 0, 1, 1], [], []>} : vector<16x32xf32>, vector<32x64xf32>, vector<16x64xf32> -> vector<16x64xf32>
    %58 = vector.broadcast %17 : vector<1x64xf32> to vector<16x64xf32>
    %59 = arith.addf %57, %58 : vector<16x64xf32>
    %c352 = arith.constant 352 : index
    %c0_19 = arith.constant 0 : index
    %60 = vector.load %arg3[%c352, %c0_19] : memref<512x128xf32, #tpu.memory_space<vmem>>, vector<32x64xf32>
    %cst_20 = arith.constant dense<0.000000e+00> : vector<16x64xf32>
    %61 = tpu.matmul %44, %60, %cst_20 {dimension_numbers = #tpu.dot_dimension_numbers<[1], [0], [0], [1], [0, 0, 1, 1], [], []>} : vector<16x32xf32>, vector<32x64xf32>, vector<16x64xf32> -> vector<16x64xf32>
    %62 = arith.addf %59, %53 : vector<16x64xf32>
    %63 = arith.addf %62, %61 : vector<16x64xf32>
    %64 = arith.mulf %63, %63 : vector<16x64xf32>
    %65 = arith.mulf %63, %64 : vector<16x64xf32>
    %cst_21 = arith.constant 4.471500e-02 : f32
    %66 = vector.broadcast %cst_21 : f32 to vector<16x64xf32>
    %67 = arith.mulf %66, %65 : vector<16x64xf32>
    %68 = arith.addf %63, %67 : vector<16x64xf32>
    %cst_22 = arith.constant 0.797884583 : f32
    %69 = vector.broadcast %cst_22 : f32 to vector<16x64xf32>
    %70 = arith.mulf %69, %68 : vector<16x64xf32>
    %71 = math.tanh %70 : vector<16x64xf32>
    %cst_23 = arith.constant 1.000000e+00 : f32
    %72 = vector.broadcast %cst_23 : f32 to vector<16x64xf32>
    %73 = arith.addf %72, %71 : vector<16x64xf32>
    %cst_24 = arith.constant 5.000000e-01 : f32
    %74 = vector.broadcast %cst_24 : f32 to vector<16x64xf32>
    %75 = arith.mulf %74, %73 : vector<16x64xf32>
    %76 = arith.mulf %63, %75 : vector<16x64xf32>
    %77 = arith.addf %59, %55 : vector<16x64xf32>
    %78 = arith.addf %77, %61 : vector<16x64xf32>
    %79 = arith.mulf %78, %78 : vector<16x64xf32>
    %80 = arith.mulf %78, %79 : vector<16x64xf32>
    %cst_25 = arith.constant 4.471500e-02 : f32
    %81 = vector.broadcast %cst_25 : f32 to vector<16x64xf32>
    %82 = arith.mulf %81, %80 : vector<16x64xf32>
    %83 = arith.addf %78, %82 : vector<16x64xf32>
    %cst_26 = arith.constant 0.797884583 : f32
    %84 = vector.broadcast %cst_26 : f32 to vector<16x64xf32>
    %85 = arith.mulf %84, %83 : vector<16x64xf32>
    %86 = math.tanh %85 : vector<16x64xf32>
    %cst_27 = arith.constant 1.000000e+00 : f32
    %87 = vector.broadcast %cst_27 : f32 to vector<16x64xf32>
    %88 = arith.addf %87, %86 : vector<16x64xf32>
    %cst_28 = arith.constant 5.000000e-01 : f32
    %89 = vector.broadcast %cst_28 : f32 to vector<16x64xf32>
    %90 = arith.mulf %89, %88 : vector<16x64xf32>
    %91 = arith.mulf %78, %90 : vector<16x64xf32>
    %92 = arith.addf %59, %55 : vector<16x64xf32>
    %93 = vector.broadcast %19 : vector<1x64xf32> to vector<16x64xf32>
    %94 = arith.addf %92, %93 : vector<16x64xf32>
    %95 = arith.mulf %94, %94 : vector<16x64xf32>
    %96 = arith.mulf %94, %95 : vector<16x64xf32>
    %cst_29 = arith.constant 4.471500e-02 : f32
    %97 = vector.broadcast %cst_29 : f32 to vector<16x64xf32>
    %98 = arith.mulf %97, %96 : vector<16x64xf32>
    %99 = arith.addf %94, %98 : vector<16x64xf32>
    %cst_30 = arith.constant 0.797884583 : f32
    %100 = vector.broadcast %cst_30 : f32 to vector<16x64xf32>
    %101 = arith.mulf %100, %99 : vector<16x64xf32>
    %102 = math.tanh %101 : vector<16x64xf32>
    %cst_31 = arith.constant 1.000000e+00 : f32
    %103 = vector.broadcast %cst_31 : f32 to vector<16x64xf32>
    %104 = arith.addf %103, %102 : vector<16x64xf32>
    %cst_32 = arith.constant 5.000000e-01 : f32
    %105 = vector.broadcast %cst_32 : f32 to vector<16x64xf32>
    %106 = arith.mulf %105, %104 : vector<16x64xf32>
    %107 = arith.mulf %94, %106 : vector<16x64xf32>
    %108 = tpu.concatenate %76, %91, %107 in 0 : vector<16x64xf32>, vector<16x64xf32>, vector<16x64xf32> -> vector<48x64xf32>
    %c448 = arith.constant 448 : index
    %c0_33 = arith.constant 0 : index
    %109 = vector.load %arg3[%c448, %c0_33] : memref<512x128xf32, #tpu.memory_space<vmem>>, vector<64x32xf32>
    %cst_34 = arith.constant dense<0.000000e+00> : vector<48x32xf32>
    %110 = tpu.matmul %108, %109, %cst_34 {dimension_numbers = #tpu.dot_dimension_numbers<[1], [0], [0], [1], [0, 0, 1, 1], [], []>} : vector<48x64xf32>, vector<64x32xf32>, vector<48x32xf32> -> vector<48x32xf32>
    %111 = vector.broadcast %18 : vector<1x32xf32> to vector<48x32xf32>
    %112 = arith.addf %110, %111 : vector<48x32xf32>
    %113 = vector.extract_strided_slice %112 {offsets = [0, 0], sizes = [16, 32], strides = [1, 1]} : vector<48x32xf32> to vector<16x32xf32>
    %114 = vector.extract_strided_slice %112 {offsets = [16, 0], sizes = [16, 32], strides = [1, 1]} : vector<48x32xf32> to vector<16x32xf32>
    %115 = vector.extract_strided_slice %112 {offsets = [32, 0], sizes = [16, 32], strides = [1, 1]} : vector<48x32xf32> to vector<16x32xf32>
    %cst_35 = arith.constant 1.000000e+00 : f32
    %116 = vector.broadcast %cst_35 : f32 to vector<16x1xf32>
    %117 = arith.divf %116, %6 : vector<16x1xf32>
    %118 = vector.broadcast %5 : vector<16x1xf32> to vector<16x32xf32>
    %119 = arith.mulf %118, %114 : vector<16x32xf32>
    %120 = arith.subf %49, %119 : vector<16x32xf32>
    %121 = vector.broadcast %117 : vector<16x1xf32> to vector<16x32xf32>
    %122 = arith.mulf %120, %121 : vector<16x32xf32>
    %123 = vector.broadcast %5 : vector<16x1xf32> to vector<16x32xf32>
    %124 = arith.mulf %123, %115 : vector<16x32xf32>
    %125 = arith.subf %49, %124 : vector<16x32xf32>
    %126 = vector.broadcast %117 : vector<16x1xf32> to vector<16x32xf32>
    %127 = arith.mulf %125, %126 : vector<16x32xf32>
    %128 = arith.subf %114, %115 : vector<16x32xf32>
    %129 = vector.broadcast %7 : vector<16x1xf32> to vector<16x32xf32>
    %130 = arith.mulf %129, %128 : vector<16x32xf32>
    %131 = arith.addf %114, %130 : vector<16x32xf32>
    %132 = arith.subf %122, %127 : vector<16x32xf32>
    %133 = vector.broadcast %7 : vector<16x1xf32> to vector<16x32xf32>
    %134 = arith.mulf %133, %132 : vector<16x32xf32>
    %135 = arith.addf %122, %134 : vector<16x32xf32>
    %136 = vector.broadcast %8 : vector<16x1xf32> to vector<16x32xf32>
    %137 = arith.mulf %136, %131 : vector<16x32xf32>
    %138 = vector.broadcast %9 : vector<16x1xf32> to vector<16x32xf32>
    %139 = arith.mulf %138, %135 : vector<16x32xf32>
    %140 = arith.addf %137, %139 : vector<16x32xf32>
    %c320_36 = arith.constant 320 : index
    %c0_37 = arith.constant 0 : index
    %141 = vector.load %arg3[%c320_36, %c0_37] : memref<512x128xf32, #tpu.memory_space<vmem>>, vector<32x64xf32>
    %cst_38 = arith.constant dense<0.000000e+00> : vector<16x64xf32>
    %142 = tpu.matmul %140, %141, %cst_38 {dimension_numbers = #tpu.dot_dimension_numbers<[1], [0], [0], [1], [0, 0, 1, 1], [], []>} : vector<16x32xf32>, vector<32x64xf32>, vector<16x64xf32> -> vector<16x64xf32>
    %143 = vector.broadcast %17 : vector<1x64xf32> to vector<16x64xf32>
    %144 = arith.addf %142, %143 : vector<16x64xf32>
    %145 = arith.addf %144, %54 : vector<16x64xf32>
    %146 = arith.addf %145, %61 : vector<16x64xf32>
    %147 = arith.mulf %146, %146 : vector<16x64xf32>
    %148 = arith.mulf %146, %147 : vector<16x64xf32>
    %cst_39 = arith.constant 4.471500e-02 : f32
    %149 = vector.broadcast %cst_39 : f32 to vector<16x64xf32>
    %150 = arith.mulf %149, %148 : vector<16x64xf32>
    %151 = arith.addf %146, %150 : vector<16x64xf32>
    %cst_40 = arith.constant 0.797884583 : f32
    %152 = vector.broadcast %cst_40 : f32 to vector<16x64xf32>
    %153 = arith.mulf %152, %151 : vector<16x64xf32>
    %154 = math.tanh %153 : vector<16x64xf32>
    %cst_41 = arith.constant 1.000000e+00 : f32
    %155 = vector.broadcast %cst_41 : f32 to vector<16x64xf32>
    %156 = arith.addf %155, %154 : vector<16x64xf32>
    %cst_42 = arith.constant 5.000000e-01 : f32
    %157 = vector.broadcast %cst_42 : f32 to vector<16x64xf32>
    %158 = arith.mulf %157, %156 : vector<16x64xf32>
    %159 = arith.mulf %146, %158 : vector<16x64xf32>
    %c448_43 = arith.constant 448 : index
    %c0_44 = arith.constant 0 : index
    %160 = vector.load %arg3[%c448_43, %c0_44] : memref<512x128xf32, #tpu.memory_space<vmem>>, vector<64x32xf32>
    %cst_45 = arith.constant dense<0.000000e+00> : vector<16x32xf32>
    %161 = tpu.matmul %159, %160, %cst_45 {dimension_numbers = #tpu.dot_dimension_numbers<[1], [0], [0], [1], [0, 0, 1, 1], [], []>} : vector<16x64xf32>, vector<64x32xf32>, vector<16x32xf32> -> vector<16x32xf32>
    %162 = vector.broadcast %18 : vector<1x32xf32> to vector<16x32xf32>
    %163 = arith.addf %161, %162 : vector<16x32xf32>
    %164 = vector.broadcast %10 : vector<16x1xf32> to vector<16x32xf32>
    %165 = arith.mulf %164, %49 : vector<16x32xf32>
    %166 = vector.broadcast %11 : vector<16x1xf32> to vector<16x32xf32>
    %167 = arith.mulf %166, %113 : vector<16x32xf32>
    %168 = arith.addf %165, %167 : vector<16x32xf32>
    %c0_46 = arith.constant 0 : index
    %c0_47 = arith.constant 0 : index
    %169 = vector.load %arg5[%c0_46, %c0_47] : memref<16x64xf32, #tpu.memory_space<vmem>>, vector<16x32xf32>
    tpu.vector_store %arg5[%c0_46, %c0_47], %168 {strides = array<i32>} : memref<16x64xf32, #tpu.memory_space<vmem>>, vector<16x32xf32>,
    %170 = vector.broadcast %12 : vector<16x1xf32> to vector<16x32xf32>
    %171 = arith.mulf %170, %140 : vector<16x32xf32>
    %172 = vector.broadcast %13 : vector<16x1xf32> to vector<16x32xf32>
    %173 = arith.mulf %172, %163 : vector<16x32xf32>
    %174 = arith.addf %171, %173 : vector<16x32xf32>
    %c0_48 = arith.constant 0 : index
    %c32 = arith.constant 32 : index
    %175 = vector.load %arg5[%c0_48, %c32] : memref<16x64xf32, #tpu.memory_space<vmem>>, vector<16x32xf32>
    tpu.vector_store %arg5[%c0_48, %c32], %174 {strides = array<i32>} : memref<16x64xf32, #tpu.memory_space<vmem>>, vector<16x32xf32>,
    return
  }
  func.func @transform_0(%arg0: i32) -> (i32, i32) {
    %c0_i32 = arith.constant 0 : i32
    %c0_i32_0 = arith.constant 0 : i32
    %c0_i32_1 = arith.constant 0 : i32
    return %c0_i32, %c0_i32_0 : i32, i32
  }
  func.func @transform_1(%arg0: i32) -> (i32, i32) {
    %c0_i32 = arith.constant 0 : i32
    %c0_i32_0 = arith.constant 0 : i32
    %c0_i32_1 = arith.constant 0 : i32
    return %c0_i32, %c0_i32_0 : i32, i32
  }
  func.func @transform_2(%arg0: i32) -> (i32, i32) {
    %c0_i32 = arith.constant 0 : i32
    %c0_i32_0 = arith.constant 0 : i32
    %c0_i32_1 = arith.constant 0 : i32
    return %c0_i32, %c0_i32_0 : i32, i32
  }
  func.func @transform_3(%arg0: i32) -> (i32, i32) {
    %c0_i32 = arith.constant 0 : i32
    %c0_i32_0 = arith.constant 0 : i32
    %c0_i32_1 = arith.constant 0 : i32
    return %c0_i32, %c0_i32_0 : i32, i32
  }
  func.func @transform_4(%arg0: i32) -> (i32, i32) {
    %c0_i32 = arith.constant 0 : i32
    %c0_i32_0 = arith.constant 0 : i32
    %c0_i32_1 = arith.constant 0 : i32
    return %c0_i32, %c0_i32_0 : i32, i32
  }
}

</mosaic_0001>

<bundles_post_ra>
// kernel: forward.3
= control target key start
LH: loop header
LB: loop body
LE: loop exit
PB: predicated region body
PF: predicated region fallthrough
CT: control target
= control target key end

     0   :  { %vm50_vm0 = vcmask 523264   ;;  %v1606_v3 = vmov 97   ;;  %v1607_v4 = vmov 0.0|0.0   ;;  %s1608_s24 = smov 64   ;;  %vm495_vm1 = vcmask 261120   ;;  %s1617_s7 = smov 32   ;;  %s2088_s2 = inlined_call_operand.vmem [shape: f32[512,128], index: 2, kind: input, shape index: {}]   ;;  %s2089_s0 = inlined_call_operand.vmem [shape: f32[16,256], index: 0, kind: input, shape index: {}]   ;;  %s2090_s3 = inlined_call_operand.vmem [shape: f32[8,128], index: 3, kind: input, shape index: {}]   ;;  %s2091_s1 = inlined_call_operand.vmem [shape: f32[48,64], index: 1, kind: input, shape index: {}]   ;;  %s2092_s4 = inlined_call_operand.vmem [shape: f32[16,64], index: 4, kind: output, shape index: {}]  }
   0x1   :  { %v132_v0 = vld [vmem:[%s2088_s2 + $0xc0] sm:$0xff]  ;;  %v133_v1 = vld [vmem:[%s2088_s2 + $0xc8] sm:$0xff]  ;;  %v134_v2 = vld [vmem:[%s2088_s2 + $0xd0] sm:$0xff]  ;;  %1566 = vset.pattern.permute.xlu0 %v1606_v3  ;;  %1410 = vmatprep.subr.bf16.mxu0 %v1607_v4  ;;  %vm1161_vm2 = vcmask 523520  }
   0x2   :  { %v1446_v5 = vpack.c.bf16 %v133_v1, %v132_v0  ;;  %v135_v6 = vld [vmem:[%s2088_s2 + $0xd8] sm:$0xff]  ;;  %v136_v8 = vld [vmem:[%s2088_s2 + $0xe0] sm:$0xff]  ;;  %v137_v9 = vld [vmem:[%s2088_s2 + $0xe8] sm:$0xff] }
   0x3   :  { %v1450_v7 = vpack.c.bf16 %v135_v6, %v134_v2  ;;  %v1666_v10 = vld [vmem:[%s2089_s0 + $0x8] sm:$0xff]  ;;  %v22_v11 = vld [vmem:[%s2088_s2] sm:$0xff]  ;;  %v24_v14 = vld [vmem:[%s2088_s2 + $0x10] sm:$0xff]  ;;  %v1454_v16 = vpack.c.bf16 %v137_v9, %v136_v8  ;;  %v1609_v6 = vmov 96  }
   0x4   :  { %1447 = vmatprep.subr.bf16.mxu1 %v1446_v5  ;;  %1286 = vmatprep.mubr.msk.f32.mxu1 %vm50_vm0, %v1666_v10  ;;  %v23_v12 = vld [vmem:[%s2088_s2 + $0x8] sm:$0xff]  ;;  %v25_v15 = vld [vmem:[%s2088_s2 + $0x18] sm:$0xff]  ;;  %v138_v17 = vld [vmem:[%s2088_s2 + $0xf0] sm:$0xff]  ;;  %1582 = vrcp.f32 %v1666_v10 }
   0x5   :  { %1449 = vmatpush3.bf16.msra.mxu1 %v1446_v5  ;;  %341 = vperm.xlu0 %1566, %v1666_v10   ;;  %v1411_v13 = vpack.c.bf16 %v23_v12, %v22_v11  ;;  %v139_v18 = vld [vmem:[%s2088_s2 + $0xf8] sm:$0xff]  ;;  %v1414_v19 = vpack.c.bf16 %v25_v15, %v24_v14  ;;  %v26_v21 = vld [vmem:[%s2088_s2 + $0x20] sm:$0xff]  ;;  %v27_v22 = vld [vmem:[%s2088_s2 + $0x28] sm:$0xff] }
   0x6   :  { %1451 = vmatprep.subr.bf16.mxu1 %v1450_v7  ;;  %1168 = vmatprep.mubr.msk.f32.mxu0 %vm50_vm0, %v1666_v10  ;;  %v1694_v20 = vld [vmem:[%s2089_s0 + $0x18] sm:$0xff]  ;;  %v1458_v23 = vpack.c.bf16 %v139_v18, %v138_v17  ;;  %v1417_v24 = vpack.c.bf16 %v27_v22, %v26_v21  ;;  %v28_v25 = vld [vmem:[%s2088_s2 + $0x30] sm:$0xff]  ;;  %v30_v28 = vld [vmem:[%s2088_s2 + $0x40] sm:$0xff]  ;;  %v1611_v17 = vmov 100   ;;  %v1612_v22 = vmov 103  }
   0x7   :  { %1412 = vmatpush1.bf16.msra.mxu0 %v1411_v13  ;;  %v29_v26 = vld [vmem:[%s2088_s2 + $0x38] sm:$0xff]  ;;  %v31_v29 = vld [vmem:[%s2088_s2 + $0x48] sm:$0xff]  ;;  %v32_v31 = vld [vmem:[%s2088_s2 + $0x50] sm:$0xff]  ;;  %1567 = vset.pattern.permute.xlu1 %v1609_v6  ;;  %1584 = vrcp.f32 %v1694_v20  ;;  %v1610_v13 = vmov 98  }
   0x8   :  { %1413 = vmatprep.subr.bf16.mxu0 %v1607_v4  ;;  %v1420_v27 = vpack.c.bf16 %v29_v26, %v28_v25  ;;  %v1423_v30 = vpack.c.bf16 %v31_v29, %v30_v28  ;;  %v33_v32 = vld [vmem:[%s2088_s2 + $0x58] sm:$0xff]  ;;  %v34_v34 = vld [vmem:[%s2088_s2 + $0x60] sm:$0xff]  ;;  %v35_v35 = vld [vmem:[%s2088_s2 + $0x68] sm:$0xff]  ;;  %331 = vperm.xlu1 %1567, %v1666_v10   ;;  %v1615_v25 = vmov 101   ;;  %v46_v26 = vlaneseq }
   0x9   :  { %1453 = vmatpush3.bf16.msra.mxu1 %v1450_v7  ;;  %345 = vperm.xlu0 %1566, %v1694_v20   ;;  %v1426_v33 = vpack.c.bf16 %v33_v32, %v32_v31  ;;  %v1429_v36 = vpack.c.bf16 %v35_v35, %v34_v34  ;;  %v36_v37 = vld [vmem:[%s2088_s2 + $0x70] sm:$0xff]  ;;  %v37_v38 = vld [vmem:[%s2088_s2 + $0x78] sm:$0xff]  ;;  %v38_v40 = vld [vmem:[%s2088_s2 + $0x80] sm:$0xff] }
   0xa   :  { %1455 = vmatprep.subr.bf16.mxu1 %v1454_v16  ;;  %v1432_v39 = vpack.c.bf16 %v37_v38, %v36_v37  ;;  %v39_v41 = vld [vmem:[%s2088_s2 + $0x88] sm:$0xff]  ;;  %v40_v43 = vld [vmem:[%s2088_s2 + $0x90] sm:$0xff]  ;;  %v41_v44 = vld [vmem:[%s2088_s2 + $0x98] sm:$0xff] }
   0xb   :  { %1415 = vmatpush1.bf16.msra.mxu0 %v1414_v19  ;;  %v1435_v42 = vpack.c.bf16 %v39_v41, %v38_v40  ;;  %v1438_v45 = vpack.c.bf16 %v41_v44, %v40_v43  ;;  %v42_v46 = vld [vmem:[%s2088_s2 + $0xa0] sm:$0xff]  ;;  %v43_v47 = vld [vmem:[%s2088_s2 + $0xa8] sm:$0xff]  ;;  %v44_v49 = vld [vmem:[%s2088_s2 + $0xb0] sm:$0xff] }
   0xc   :  { %1416 = vmatprep.subr.bf16.mxu0 %v1607_v4  ;;  %v1441_v48 = vpack.c.bf16 %v43_v47, %v42_v46  ;;  %v45_v50 = vld [vmem:[%s2088_s2 + $0xb8] sm:$0xff]  ;;  %v17_v52 = vld [vmem:[%s2089_s0] sm:$0xff]  ;;  %v19_v53 = vld [vmem:[%s2089_s0 + $0x10] sm:$0xff]  ;;  %335 = vperm.xlu1 %1567, %v1694_v20  }
   0xd   :  { %1457 = vmatpush3.bf16.msra.mxu1 %v1454_v16  ;;  %v1444_v51 = vpack.c.bf16 %v45_v50, %v44_v49  ;;  %v237_v54 = vld [vmem:[%s2088_s2 + $0x100] sm:$0xff]  ;;  %v238_v55 = vld [vmem:[%s2088_s2 + $0x108] sm:$0xff]  ;;  %v239_v57 = vld [vmem:[%s2088_s2 + $0x110] sm:$0xff] }
   0xe   :  { %1459 = vmatprep.subr.bf16.mxu1 %v1458_v23  ;;  %v1462_v56 = vpack.c.bf16 %v238_v55, %v237_v54  ;;  %v240_v58 = vld [vmem:[%s2088_s2 + $0x118] sm:$0xff]  ;;  %v241_v60 = vld [vmem:[%s2088_s2 + $0x120] sm:$0xff]  ;;  %v242_v61 = vld [vmem:[%s2088_s2 + $0x128] sm:$0xff]  ;;  %v1583_v5 = vpop.eup %1582 }
   0xf   :  { %1418 = vmatpush1.bf16.msra.mxu0 %v1417_v24  ;;  %v1466_v59 = vpack.c.bf16 %v240_v58, %v239_v57  ;;  %v1470_v62 = vpack.c.bf16 %v242_v61, %v241_v60  ;;  %v243_v63 = vld [vmem:[%s2088_s2 + $0x130] sm:$0xff]  ;;  %v244_v0 = vld [vmem:[%s2088_s2 + $0x138] sm:$0xff]  ;;  %v366_v8 = vld [vmem:[%s2088_s2 + $0x180] sm:$0xff]  ;;  %v1614_v24 = vmov 104  }
  0x10   :  { %1419 = vmatprep.subr.bf16.mxu0 %v1607_v4  ;;  %v1474_v1 = vpack.c.bf16 %v244_v0, %v243_v63  ;;  %v367_v9 = vld [vmem:[%s2088_s2 + $0x188] sm:$0xff]  ;;  %1568 = vset.pattern.permute.xlu1 %v1606_v3  ;;  %v487_v15 = vld [vmem:[%s2088_s2 + $0x140] sm:$0xff]  ;;  %v489_v3 = vld [vmem:[%s2088_s2 + $0x150] sm:$0xff] }
  0x11   :  { %1461 = vmatpush3.bf16.msra.mxu1 %v1458_v23  ;;  %v1812_v11 = vpack.c.bf16 %v367_v9, %v366_v8  ;;  %v1585_v14 = vpop.eup %1584  ;;  %v488_v16 = vld [vmem:[%s2088_s2 + $0x148] sm:$0xff]  ;;  %v490_v19 = vld [vmem:[%s2088_s2 + $0x158] sm:$0xff]  ;;  %v1613_v23 = vmov 99   ;;  %v1858_v29 = vld [vmem:[%s2090_s3] sm:$0xff] }
  0x12   :  { %1463 = vmatprep.subr.bf16.mxu1 %v1462_v56  ;;  %v1825_v18 = vpack.c.bf16 %v488_v16, %v487_v15  ;;  %v1836_v21 = vpack.c.bf16 %v490_v19, %v489_v3  ;;  %v360_v57 = vld [vmem:[%s2091_s1] sm:$0xff]  ;;  %v372_v0 = vld [vmem:[%s2088_s2 + $0x1b0] sm:$0xff] }
  0x13   :  { %1421 = vmatpush1.bf16.msra.mxu0 %v1420_v27  ;;  %v1852_v27 = vshrl.u32 %v46_v26, 7  ;;  %v370_v58 = vld [vmem:[%s2088_s2 + $0x1a0] sm:$0xff]  ;;  %v362_v26 = vld [vmem:[%s2091_s1 + $0x10] sm:$0xff] }
  0x14   :  { %1287 = vmatmul.mubr.msk.f32.vlgmr.msra.gmra.mrb[0].mxu1 %vm50_vm0, %v1694_v20  ;;  %1422 = vmatprep.subr.bf16.mxu0 %v1607_v4 }
  0x15   :  { %1465 = vmatpush3.bf16.msra.mxu1 %v1462_v56  ;;  %v142_v28 = vsub.s32 1, %v1852_v27 }
  0x16   :  { %1467 = vmatprep.subr.bf16.mxu1 %v1466_v59 }
  0x17   :  { %1424 = vmatpush1.bf16.msra.mxu0 %v1423_v30  ;;  %v143_v30 = vrot.slane %v1858_v29, %v142_v28 }
  0x18   :  { %1425 = vmatprep.subr.bf16.mxu0 %v1607_v4 }
  0x19   :  { %1469 = vmatpush3.bf16.msra.mxu1 %v1466_v59  ;;  %v371_v59 = vld [vmem:[%s2088_s2 + $0x1a8] sm:$0xff] }
  0x1a   :  { %1471 = vmatprep.subr.bf16.mxu1 %v1470_v62 }
  0x1b   :  { %1427 = vmatpush1.bf16.msra.mxu0 %v1426_v33 }
  0x1c   :  { %1428 = vmatprep.subr.bf16.mxu0 %v1607_v4 }
  0x1d   :  { %1473 = vmatpush3.bf16.msra.mxu1 %v1470_v62  ;;  %v1486_v62 = vpack.c.bf16 %v371_v59, %v370_v58  ;;  %v735_v58 = vld [vmem:[%s2088_s2 + $0x1e8] sm:$0xff] }
  0x1e   :  { %1475 = vmatprep.subr.bf16.mxu1 %v1474_v1 }
  0x1f   :  { %1430 = vmatpush1.bf16.msra.mxu0 %v1429_v36 }
  0x20   :  { %1431 = vmatprep.subr.bf16.mxu0 %v1607_v4 }
  0x21   :  { %1477 = vmatpush3.bf16.msra.mxu1 %v1474_v1  ;;  %v373_v1 = vld [vmem:[%s2088_s2 + $0x1b8] sm:$0xff] }
  0x22   :  { %1479 = vmatprep.subr.bf16.mxu1 %v1812_v11  ;;  %v1490_v8 = vpack.c.bf16 %v373_v1, %v372_v0  ;;  %v1616_v0 = vmov 102   ;;  %v708_v1 = vsub.s32 5, %v1852_v27 }
  0x23   :  { %1433 = vmatpush1.bf16.msra.mxu0 %v1432_v39 }
  0x24   :  { %1434 = vmatprep.subr.bf16.mxu0 %v1607_v4 }
  0x27   :  { %1436 = vmatpush1.bf16.msra.mxu0 %v1435_v42 }
  0x28   :  { %1437 = vmatprep.subr.bf16.mxu0 %v1607_v4 }
  0x2b   :  { %1439 = vmatpush1.bf16.msra.mxu0 %v1438_v45 }
  0x2c   :  { %1440 = vmatprep.subr.bf16.mxu0 %v1607_v4 }
  0x2f   :  { %1442 = vmatpush1.bf16.msra.mxu0 %v1441_v48 }
  0x30   :  { %1443 = vmatprep.subr.bf16.mxu0 %v1607_v4 }
  0x33   :  { %1445 = vmatpush1.bf16.msra.mxu0 %v1444_v51  ;;  %v368_v51 = vld [vmem:[%s2088_s2 + $0x190] sm:$0xff] }
  0x34   :  { %1495 = vmatprep.subr.bf16.mxu0 %v1825_v18 }
  0x36   :  { %122 = vmatmul.mubr.f32.vlgmr.msra.gmra.mrb[0].mxu0 %v17_v52  ;;  %v369_v52 = vld [vmem:[%s2088_s2 + $0x198] sm:$0xff] }
  0x37   :  { %1169 = vmatprep.mubr.msk.f32.mxu0 %vm50_vm0, %v1694_v20  ;;  %1497 = vmatpush3.bf16.msra.mxu0 %v1825_v18  ;;  %v1482_v56 = vpack.c.bf16 %v369_v52, %v368_v51  ;;  %v731_v52 = vld [vmem:[%s2088_s2 + $0x1c8] sm:$0xff] }
  0x38   :  { %1499 = vmatprep.subr.bf16.mxu0 %v1836_v21 }
  0x3a   :  { %127 = vmatmul.mubr.f32.gmra.mrb[2].mxu0 %v19_v53  ;;  %v48_v53 = vsub.s32 0, %v1852_v27 }
  0x3b   :  { %1501 = vmatpush3.bf16.msra.mxu0 %v1836_v21 }
  0x3c   :  { %v49_v60 = vrot.slane %v1858_v29, %v48_v53 }
  0x84   :  { %v342_v2 = vpop.permute.xlu0 %341 }
  0x85   :  { %v348_v4 = vmul.f32 %v342_v2, %v1666_v10 }
  0x87   :  { %352 = vrot.lane.b32.xlu0 %v348_v4, %s1608_s24  ;;  %v1881_v61 = vpop.permute.xlu1 %331 }
  0x88   :  { %v346_v7 = vpop.permute.xlu0 %345 }
  0x89   :  { %v349_v12 = vmul.f32 %v346_v7, %v1694_v20 }
  0x8b   :  { %865 = vperm.xlu0 %1566, %v1583_v5   ;;  %354 = vrot.lane.b32.xlu1 %v349_v12, %s1608_s24  ;;  %v1890_v5 = vpop.permute.xlu1 %335 }
  0x8f   :  { %1569 = vset.pattern.permute.xlu0 %v1610_v13  ;;  %870 = vperm.xlu1 %1568, %v1585_v14   ;;  %v578_v14 = vld [vmem:[%s2088_s2 + $0x168] sm:$0xff] }
  0x90   :  { %884 = vperm.xlu0 %1569, %v1666_v10  }
  0x93   :  { %1570 = vset.pattern.permute.xlu1 %v1610_v13  ;;  %v577_v13 = vld [vmem:[%s2088_s2 + $0x160] sm:$0xff] }
  0x94   :  { %1572 = vset.pattern.permute.xlu0 %v1611_v17  ;;  %888 = vperm.xlu1 %1570, %v1694_v20   ;;  %v1502_v3 = vpack.c.bf16 %v578_v14, %v577_v13 }
  0x95   :  { %912 = vperm.xlu0 %1572, %v1666_v10  }
  0x98   :  { %1571 = vset.pattern.permute.xlu1 %v1613_v23  ;;  %v580_v23 = vld [vmem:[%s2088_s2 + $0x178] sm:$0xff] }
  0x99   :  { %1574 = vset.pattern.permute.xlu0 %v1612_v22  ;;  %902 = vperm.xlu1 %1571, %v1666_v10  }
  0x9a   :  { %1132 = vperm.xlu0 %1574, %v1666_v10  }
  0x9d   :  { %906 = vperm.xlu1 %1571, %v1694_v20  }
  0x9e   :  { %1577 = vset.pattern.permute.xlu0 %v1614_v24 }
  0x9f   :  { %1146 = vperm.xlu0 %1577, %v1694_v20  }
  0xa1   :  { %1573 = vset.pattern.permute.xlu1 %v1611_v17 }
  0xa2   :  { %916 = vperm.xlu1 %1573, %v1694_v20  }
  0xa3   :  { %1579 = vset.pattern.permute.xlu0 %v1616_v0 }
  0xa4   :  { %1118 = vperm.xlu0 %1579, %v1666_v10  }
  0xa6   :  { %1575 = vset.pattern.permute.xlu1 %v1612_v22  ;;  %v579_v22 = vld [vmem:[%s2088_s2 + $0x170] sm:$0xff] }
  0xa7   :  { %1136 = vperm.xlu1 %1575, %v1694_v20   ;;  %v1506_v28 = vpack.c.bf16 %v580_v23, %v579_v22 }
  0xa8   :  { %1581 = vset.pattern.permute.xlu0 %v1614_v24 }
  0xab   :  { %1576 = vset.pattern.permute.xlu1 %v1614_v24 }
  0xac   :  { %1142 = vperm.xlu1 %1576, %v1666_v10  }
  0xb0   :  { %1578 = vset.pattern.permute.xlu1 %v1615_v25  ;;  %v361_v25 = vld [vmem:[%s2091_s1 + $0x8] sm:$0xff] }
  0xb1   :  { %1108 = vperm.xlu1 %1578, %v1666_v10  }
  0xb5   :  { %1112 = vperm.xlu1 %1578, %v1694_v20  }
  0xb9   :  { %1580 = vset.pattern.permute.xlu1 %v1616_v0 }
  0xba   :  { %1122 = vperm.xlu1 %1580, %v1694_v20  }
  0xe7   :  { %v1288_v31 = vpop.f32.mrb[0].mxu1 }
  0xe8   :  { %v216_v32 = vadd.f32 %v1288_v31, %v143_v30  ;;  %v210_v33 = vpop.f32.mrb[1].mxu1  ;;  %v364_v31 = vld [vmem:[%s2091_s1 + $0x20] sm:$0xff] }
  0xe9   :  { %v211_v34 = vadd.f32 %v210_v33, %v143_v30  ;;  %v363_v30 = vld [vmem:[%s2091_s1 + $0x18] sm:$0xff]  ;;  %v247_v33 = vsub.s32 2, %v1852_v27 }
  0xea   :  { %v220_v35 = vmul.f32 %v216_v32, %v216_v32 }
  0xeb   :  { %v219_v36 = vmul.f32 %v211_v34, %v211_v34 }
  0xec   :  { %v222_v37 = vmul.f32 %v220_v35, %v216_v32 }
  0xed   :  { %v221_v38 = vmul.f32 %v219_v36, %v211_v34 }
  0xee   :  { %v224_v39 = vmul.f32 0.044715, %v222_v37 }
  0xef   :  { %v223_v40 = vmul.f32 0.044715, %v221_v38 }
  0xf0   :  { %v226_v41 = vadd.f32 %v224_v39, %v216_v32  ;;  %v493_v39 = vsub.s32 3, %v1852_v27 }
  0xf1   :  { %v225_v42 = vadd.f32 %v223_v40, %v211_v34 }
  0xf2   :  { %v228_v43 = vmul.f32 0.7978846, %v226_v41  ;;  %v1944_v40 = vrot.slane %v1858_v29, %v493_v39 }
  0xf3   :  { %v227_v44 = vmul.f32 0.7978846, %v225_v42 }
  0xf4   :  { %1586 = vtanh.f32 %v228_v43 }
  0xf5   :  { %1588 = vtanh.f32 %v227_v44 }
  0xf9   :  { %v353_v7 = vpop.permute.xlu0 %352 }
  0xfd   :  { %v355_v17 = vpop.permute.xlu1 %354 }
  0xfe   :  { %v1587_v45 = vpop.eup %1586 }
  0xff   :  { %v1589_v46 = vpop.eup %1588  ;;  %v232_v47 = vadd.f32 1.0, %v1587_v45 }
 0x100   :  { %v231_v48 = vadd.f32 1.0, %v1589_v46 }
 0x101   :  { %v234_v49 = vmul.f32 0.5, %v232_v47 }
 0x102   :  { %v233_v50 = vmul.f32 0.5, %v231_v48 }
 0x103   :  { %v236_v55 = vmul.f32 %v234_v49, %v216_v32  ;;  %v365_v32 = vld [vmem:[%s2091_s1 + $0x28] sm:$0xff] }
 0x104   :  { %v235_v54 = vmul.f32 %v233_v50, %v211_v34  ;;  %v248_v34 = vrot.slane %v1858_v29, %v247_v33 }
 0x106   :  { %1305 = vmatprep.mubr.msk.f32.mxu1 %vm50_vm0, %v235_v54  ;;  %v732_v54 = vld [vmem:[%s2088_s2 + $0x1d0] sm:$0xff] }
 0x107   :  { %1306 = vmatmul.mubr.msk.f32.vlgmr.msra.gmra.mrb[2].mxu1 %vm50_vm0, %v236_v55  ;;  %v733_v55 = vld [vmem:[%s2088_s2 + $0x1d8] sm:$0xff] }
 0x108   :  { %1481 = vmatpush3.bf16.msra.mxu1 %v1812_v11  ;;  %1324 = vmatprep.mubr.msk.f32.mxu1 %vm50_vm0, %v360_v57  ;;  %v734_v57 = vld [vmem:[%s2088_s2 + $0x1e0] sm:$0xff] }
 0x109   :  { %1483 = vmatprep.subr.bf16.mxu1 %v1482_v56  ;;  %v123_v63 = vpop.f32.mrb[0].mxu0  ;;  %v1975_v59 = vpack.c.bf16 %v735_v58, %v734_v57 }
 0x10a   :  { %v124_v2 = vadd.f32 %v123_v63, %v49_v60  ;;  %v125_v4 = vpop.f32.mrb[1].mxu0 }
 0x10c   :  { %1485 = vmatpush3.bf16.msra.mxu1 %v1482_v56  ;;  %v338_v6 = vmul.f32 %v1881_v61, %v124_v2  ;;  %v1965_v56 = vpack.c.bf16 %v733_v55, %v732_v54  ;;  %v709_v2 = vrot.slane %v1858_v29, %v708_v1 }
 0x10d   :  { %1487 = vmatprep.subr.bf16.mxu1 %v1486_v62  ;;  %v128_v9 = vpop.f32.mrb[2].mxu0 }
 0x10e   :  { %v1893_v11 = vadd.f32 %v353_v7, %v338_v6  ;;  %v129_v12 = vadd.f32 %v128_v9, %v49_v60  ;;  %v130_v15 = vpop.f32.mrb[3].mxu0  ;;  %v736_v60 = vld [vmem:[%s2088_s2 + $0x1f0] sm:$0xff] }
 0x110   :  { %1489 = vmatpush3.bf16.msra.mxu1 %v1486_v62  ;;  %v339_v16 = vmul.f32 %v1890_v5, %v129_v12  ;;  %1341 = vmatprep.mubr.msk.f32.mxu0 %vm495_vm1, %v1893_v11  ;;  %v737_v62 = vld [vmem:[%s2088_s2 + $0x1f8] sm:$0xff] }
 0x111   :  { %1491 = vmatprep.subr.bf16.mxu1 %v1490_v8  ;;  %v1985_v63 = vpack.c.bf16 %v737_v62, %v736_v60 }
 0x112   :  { %v1904_v19 = vadd.f32 %v355_v17, %v339_v16 }
 0x114   :  { %1493 = vmatpush3.bf16.msra.mxu1 %v1490_v8  ;;  %1342 = vmatmul.mubr.msk.f32.vlgmr.msra.gmra.mrb[4].mxu0 %vm495_vm1, %v1904_v19 }
 0x115   :  { %1503 = vmatprep.subr.bf16.mxu1 %v1502_v3 }
 0x117   :  { %1325 = vmatmul.mubr.msk.f32.vlgmr.msra.gmra.mrb[4].mxu1 %vm50_vm0, %v361_v25 }
 0x118   :  { %1327 = vmatprep.mubr.msk.f32.mxu1 %vm50_vm0, %v362_v26  ;;  %1505 = vmatpush3.bf16.msra.mxu1 %v1502_v3 }
 0x119   :  { %1507 = vmatprep.subr.bf16.mxu1 %v1506_v28 }
 0x11b   :  { %1328 = vmatmul.mubr.msk.f32.gmra.mrb[6].mxu1 %vm50_vm0, %v363_v30 }
 0x11c   :  { %1330 = vmatprep.mubr.msk.f32.mxu1 %vm50_vm0, %v364_v31  ;;  %1509 = vmatpush3.bf16.msra.mxu1 %v1506_v28 }
 0x11d   :  { %1527 = vmatprep.subr.bf16.mxu1 %v1825_v18 }
 0x11f   :  { %1331 = vmatmul.mubr.msk.f32.gmra.mrb[8].mxu1 %vm50_vm0, %v365_v32 }
 0x1da   :  { %v1307_v35 = vpop.f32.mrb[2].mxu1 }
 0x1db   :  { %v321_v36 = vpop.f32.mrb[3].mxu1  ;;  %v327_v38 = vadd.f32 %v1307_v35, %v248_v34 }
 0x1dc   :  { %v322_v37 = vadd.f32 %v321_v36, %v248_v34 }
 0x1de   :  { %1352 = vmatprep.mubr.msk.f32.mxu1 %vm495_vm1, %v322_v37 }
 0x1df   :  { %1353 = vmatmul.mubr.msk.f32.vlgmr.msra.gmra.mrb[10].mxu1 %vm495_vm1, %v327_v38 }
 0x1e0   :  { %1529 = vmatpush3.bf16.msra.mxu1 %v1825_v18 }
 0x1e1   :  { %1531 = vmatprep.subr.bf16.mxu1 %v1836_v21 }
 0x1e4   :  { %1533 = vmatpush3.bf16.msra.mxu1 %v1836_v21  ;;  %v730_v21 = vld [vmem:[%s2088_s2 + $0x1c0] sm:$0xff] }
 0x1e5   :  { %v1954_v53 = vpack.c.bf16 %v731_v52, %v730_v21 }
 0x1e7   :  { %v1343_v41 = vpop.f32.mrb[4].mxu0  ;;  %1511 = vmatprep.subr.bf16.mxu0 %v1954_v53  ;;  %1535 = vmatprep.subr.bf16.mxu1 %v1954_v53 }
 0x1e8   :  { %v568_v42 = vpop.f32.mrb[5].mxu0  ;;  %v574_v43 = vadd.f32 %v1343_v41, %v1944_v40  ;;  %1513 = vmatpush3.bf16.msra.mxu0 %v1954_v53 }
 0x1e9   :  { %v569_v45 = vadd.f32 %v568_v42, %v1944_v40  ;;  %1515 = vmatprep.subr.bf16.mxu0 %v1965_v56 }
 0x1ea   :  { %v1326_v44 = vpop.f32.mrb[4].mxu1 }
 0x1eb   :  { %v663_v46 = vadd.f32 %v1326_v44, %v574_v43  ;;  %v458_v47 = vpop.f32.mrb[5].mxu1 }
 0x1ec   :  { %v662_v48 = vadd.f32 %v569_v45, %v458_v47  ;;  %1517 = vmatpush3.bf16.msra.mxu0 %v1965_v56 }
 0x1ed   :  { %1519 = vmatprep.subr.bf16.mxu0 %v1975_v59 }
 0x1f0   :  { %1521 = vmatpush3.bf16.msra.mxu0 %v1975_v59 }
 0x1f1   :  { %1523 = vmatprep.subr.bf16.mxu0 %v1985_v63 }
 0x1f2   :  { %v1332_v18 = vpop.f32.mrb[8].mxu1 }
 0x1f3   :  { %v685_v49 = vadd.f32 %v1332_v18, %v574_v43  ;;  %v478_v50 = vpop.f32.mrb[9].mxu1 }
 0x1f4   :  { %v684_v51 = vadd.f32 %v569_v45, %v478_v50  ;;  %1525 = vmatpush3.bf16.msra.mxu0 %v1985_v63 }
 0x1f5   :  { %v1998_v7 = vadd.f32 %v709_v2, %v685_v49 }
 0x1f6   :  { %v1994_v4 = vadd.f32 %v709_v2, %v684_v51 }
 0x1f7   :  { %v713_v20 = vmul.f32 %v1998_v7, %v1998_v7 }
 0x1f8   :  { %v712_v6 = vmul.f32 %v1994_v4, %v1994_v4 }
 0x1f9   :  { %v715_v14 = vmul.f32 %v713_v20, %v1998_v7 }
 0x1fa   :  { %v714_v8 = vmul.f32 %v712_v6, %v1994_v4 }
 0x1fb   :  { %v717_v30 = vmul.f32 0.044715, %v715_v14 }
 0x1fc   :  { %v716_v9 = vmul.f32 0.044715, %v714_v8 }
 0x1fd   :  { %v719_v41 = vadd.f32 %v717_v30, %v1998_v7 }
 0x1fe   :  { %v718_v22 = vadd.f32 %v716_v9, %v1994_v4 }
 0x200   :  { %v720_v35 = vmul.f32 0.7978846, %v718_v22 }
 0x202   :  { %1590 = vtanh.f32 %v720_v35 }
 0x20c   :  { %v1591_v18 = vpop.eup %1590 }
 0x20d   :  { %v724_v0 = vadd.f32 1.0, %v1591_v18 }
 0x20f   :  { %v726_v14 = vmul.f32 0.5, %v724_v0 }
 0x211   :  { %v728_v22 = vmul.f32 %v726_v14, %v1994_v4 }
 0x2b2   :  { %v2003_v10 = vpop.f32.mrb[10].mxu1 }
 0x2b3   :  { %v665_v24 = vadd.f32 %v2003_v10, %v663_v46  ;;  %v687_v12 = vadd.f32 %v2003_v10, %v685_v49  ;;  %v2007_v13 = vpop.f32.mrb[11].mxu1 }
 0x2b4   :  { %v664_v15 = vadd.f32 %v662_v48, %v2007_v13  ;;  %v686_v16 = vadd.f32 %v684_v51, %v2007_v13  ;;  %v721_v48 = vmul.f32 0.7978846, %v719_v41 }
 0x2b5   :  { %v667_v17 = vmul.f32 %v665_v24, %v665_v24  ;;  %v689_v3 = vmul.f32 %v687_v12, %v687_v12 }
 0x2b6   :  { %v666_v23 = vmul.f32 %v664_v15, %v664_v15  ;;  %v688_v25 = vmul.f32 %v686_v16, %v686_v16 }
 0x2b7   :  { %v669_v26 = vmul.f32 %v667_v17, %v665_v24  ;;  %v691_v28 = vmul.f32 %v689_v3, %v687_v12 }
 0x2b8   :  { %v668_v31 = vmul.f32 %v666_v23, %v664_v15  ;;  %v690_v32 = vmul.f32 %v688_v25, %v686_v16 }
 0x2b9   :  { %v671_v33 = vmul.f32 0.044715, %v669_v26  ;;  %v693_v34 = vmul.f32 0.044715, %v691_v28  ;;  %v866_v28 = vpop.permute.xlu0 %865 }
 0x2ba   :  { %v670_v36 = vmul.f32 0.044715, %v668_v31  ;;  %v692_v37 = vmul.f32 0.044715, %v690_v32 }
 0x2bb   :  { %v673_v38 = vadd.f32 %v671_v33, %v665_v24  ;;  %v695_v39 = vadd.f32 %v693_v34, %v687_v12 }
 0x2bc   :  { %v672_v42 = vadd.f32 %v670_v36, %v664_v15  ;;  %v694_v43 = vadd.f32 %v692_v37, %v686_v16 }
 0x2bd   :  { %v675_v44 = vmul.f32 0.7978846, %v673_v38  ;;  %v697_v45 = vmul.f32 0.7978846, %v695_v39  ;;  %v885_v30 = vpop.permute.xlu0 %884 }
 0x2be   :  { %v674_v46 = vmul.f32 0.7978846, %v672_v42  ;;  %v696_v47 = vmul.f32 0.7978846, %v694_v43 }
 0x2bf   :  { %1592 = vtanh.f32 %v675_v44 }
 0x2c0   :  { %1594 = vtanh.f32 %v697_v45 }
 0x2c1   :  { %1596 = vtanh.f32 %v674_v46  ;;  %v913_v31 = vpop.permute.xlu0 %912 }
 0x2c2   :  { %1598 = vtanh.f32 %v696_v47 }
 0x2c3   :  { %1600 = vtanh.f32 %v721_v48 }
 0x2c5   :  { %v2028_v32 = vpop.permute.xlu0 %1132 }
 0x2c9   :  { %v1593_v49 = vpop.eup %1592  ;;  %v2031_v34 = vpop.permute.xlu0 %1146 }
 0x2ca   :  { %v1595_v50 = vpop.eup %1594  ;;  %v679_v51 = vadd.f32 1.0, %v1593_v49 }
 0x2cb   :  { %v1597_v21 = vpop.eup %1596  ;;  %v701_v58 = vadd.f32 1.0, %v1595_v50 }
 0x2cc   :  { %v1599_v52 = vpop.eup %1598  ;;  %v678_v54 = vadd.f32 1.0, %v1597_v21  ;;  %v681_v55 = vmul.f32 0.5, %v679_v51 }
 0x2cd   :  { %v700_v57 = vadd.f32 1.0, %v1599_v52  ;;  %v1601_v60 = vpop.eup %1600  ;;  %v703_v8 = vmul.f32 0.5, %v701_v58  ;;  %v1119_v42 = vpop.permute.xlu0 %1118 }
 0x2ce   :  { %v680_v62 = vmul.f32 0.5, %v678_v54  ;;  %v683_v6 = vmul.f32 %v681_v55, %v665_v24  ;;  %v725_v20 = vadd.f32 1.0, %v1601_v60 }
 0x2cf   :  { %v702_v1 = vmul.f32 0.5, %v700_v57  ;;  %v705_v17 = vmul.f32 %v703_v8, %v687_v12 }
 0x2d0   :  { %v682_v2 = vmul.f32 %v680_v62, %v664_v15  ;;  %v727_v3 = vmul.f32 0.5, %v725_v20  ;;  %v871_v15 = vpop.permute.xlu1 %870 }
 0x2d1   :  { %v704_v9 = vmul.f32 %v702_v1, %v686_v16 }
 0x2d2   :  { %1371 = vmatprep.mubr.msk.f32.mxu0 %vm50_vm0, %v682_v2  ;;  %v729_v24 = vmul.f32 %v727_v3, %v1998_v7  ;;  %v740_v7 = vsub.s32 4, %v1852_v27 }
 0x2d3   :  { %1372 = vmatmul.mubr.msk.f32.vlgmr.msra.gmra.mrb[6].mxu0 %vm50_vm0, %v683_v6 }
 0x2d4   :  { %1374 = vmatprep.mubr.msk.f32.mxu0 %vm50_vm0, %v704_v9  ;;  %v889_v23 = vpop.permute.xlu1 %888  ;;  %v2034_v36 = vrot.slane %v1858_v29, %v740_v7 }
 0x2d7   :  { %1375 = vmatmul.mubr.msk.f32.gmra.mrb[8].mxu0 %vm50_vm0, %v705_v17 }
 0x2d8   :  { %1377 = vmatprep.mubr.msk.f32.mxu0 %vm50_vm0, %v728_v22  ;;  %v2022_v16 = vpop.permute.xlu1 %902 }
 0x2db   :  { %1378 = vmatmul.mubr.msk.f32.gmra.mrb[10].mxu0 %vm50_vm0, %v729_v24 }
 0x2dc   :  { %v907_v25 = vpop.permute.xlu1 %906 }
 0x2e0   :  { %v917_v26 = vpop.permute.xlu1 %916 }
 0x2e4   :  { %v2024_v12 = vpop.permute.xlu1 %1136 }
 0x2e8   :  { %v2026_v4 = vpop.permute.xlu1 %1142 }
 0x2ec   :  { %v1109_v33 = vpop.permute.xlu1 %1108 }
 0x2ed   :  { %v1115_v46 = vmul.f32 %v1109_v33, %v1893_v11 }
 0x2f0   :  { %v1113_v35 = vpop.permute.xlu1 %1112 }
 0x2f1   :  { %v1116_v44 = vmul.f32 %v1113_v35, %v1904_v19 }
 0x2f4   :  { %v1123_v38 = vpop.permute.xlu1 %1122 }
 0x3a6   :  { %v1373_v37 = vpop.f32.mrb[6].mxu0 }
 0x3a7   :  { %v832_v39 = vadd.f32 %v1373_v37, %v2034_v36  ;;  %v826_v41 = vpop.f32.mrb[7].mxu0 }
 0x3a8   :  { %v827_v43 = vadd.f32 %v826_v41, %v2034_v36 }
 0x3a9   :  { %v1126_v45 = vmul.f32 %v1123_v38, %v832_v39 }
 0x3aa   :  { %v1125_v27 = vmul.f32 %v1119_v42, %v827_v43  ;;  %v1376_v47 = vpop.f32.mrb[8].mxu0 }
 0x3ab   :  { %v1128_v48 = vadd.f32 %v1126_v45, %v1116_v44  ;;  %v842_v18 = vadd.f32 %v1376_v47, %v2034_v36  ;;  %v836_v29 = vpop.f32.mrb[9].mxu0 }
 0x3ac   :  { %v1127_v49 = vadd.f32 %v1125_v27, %v1115_v46  ;;  %v837_v50 = vadd.f32 %v836_v29, %v2034_v36 }
 0x3ad   :  { %1130 = vst.msk [vmem:[%s2092_s4 + $0x8] sm:$0xff] %vm495_vm1, %v1128_v48  ;;  %v860_v51 = vmul.f32 %v842_v18, %v1890_v5 }
 0x3ae   :  { %1129 = vst.msk [vmem:[%s2092_s4] sm:$0xff] %vm495_vm1, %v1127_v49  ;;  %v859_v21 = vmul.f32 %v837_v50, %v1881_v61  ;;  %v1379_v52 = vpop.f32.mrb[10].mxu0 }
 0x3af   :  { %v852_v54 = vadd.f32 %v1379_v52, %v2034_v36  ;;  %v846_v55 = vpop.f32.mrb[11].mxu0  ;;  %v862_v58 = vsub.f32 %v1904_v19, %v860_v51 }
 0x3b0   :  { %v847_v57 = vadd.f32 %v846_v55, %v2034_v36  ;;  %v861_v0 = vsub.f32 %v1893_v11, %v859_v21 }
 0x3b1   :  { %v876_v60 = vmul.f32 %v852_v54, %v1890_v5  ;;  %v882_v62 = vsub.f32 %v842_v18, %v852_v54  ;;  %v874_v14 = vmul.f32 %v871_v15, %v862_v58 }
 0x3b2   :  { %v875_v1 = vmul.f32 %v847_v57, %v1881_v61  ;;  %v881_v2 = vsub.f32 %v837_v50, %v847_v57  ;;  %v873_v22 = vmul.f32 %v866_v28, %v861_v0 }
 0x3b3   :  { %v878_v6 = vsub.f32 %v1904_v19, %v876_v60  ;;  %v892_v8 = vmul.f32 %v889_v23, %v882_v62 }
 0x3b4   :  { %v877_v20 = vsub.f32 %v1893_v11, %v875_v1  ;;  %v891_v9 = vmul.f32 %v885_v30, %v881_v2 }
 0x3b5   :  { %v880_v17 = vmul.f32 %v878_v6, %v871_v15  ;;  %v894_v3 = vadd.f32 %v892_v8, %v842_v18 }
 0x3b6   :  { %v879_v24 = vmul.f32 %v877_v20, %v866_v28  ;;  %v893_v33 = vadd.f32 %v891_v9, %v837_v50 }
 0x3b7   :  { %v896_v7 = vsub.f32 %v874_v14, %v880_v17  ;;  %v910_v61 = vmul.f32 %v907_v25, %v894_v3 }
 0x3b8   :  { %v895_v5 = vsub.f32 %v873_v22, %v879_v24  ;;  %v909_v19 = vmul.f32 %v2022_v16, %v893_v33 }
 0x3b9   :  { %v898_v35 = vmul.f32 %v896_v7, %v889_v23 }
 0x3ba   :  { %v897_v37 = vmul.f32 %v895_v5, %v885_v30 }
 0x3bb   :  { %v900_v38 = vadd.f32 %v898_v35, %v874_v14 }
 0x3bc   :  { %v899_v39 = vadd.f32 %v897_v37, %v873_v22 }
 0x3bd   :  { %v920_v41 = vmul.f32 %v917_v26, %v900_v38 }
 0x3be   :  { %v919_v42 = vmul.f32 %v913_v31, %v899_v39 }
 0x3bf   :  { %v922_v43 = vadd.f32 %v920_v41, %v910_v61 }
 0x3c0   :  { %v921_v11 = vadd.f32 %v919_v42, %v909_v19 }
 0x3c1   :  { %v1140_v55 = vmul.f32 %v2024_v12, %v922_v43 }
 0x3c2   :  { %1388 = vmatprep.mubr.msk.f32.mxu1 %vm495_vm1, %v921_v11  ;;  %v1139_v58 = vmul.f32 %v2028_v32, %v921_v11 }
 0x3c3   :  { %1389 = vmatmul.mubr.msk.f32.vlgmr.msra.gmra.mrb[6].mxu1 %vm495_vm1, %v922_v43 }
 0x3c4   :  { %1537 = vmatpush3.bf16.msra.mxu1 %v1954_v53 }
 0x3c5   :  { %1539 = vmatprep.subr.bf16.mxu1 %v1965_v56 }
 0x3c8   :  { %1541 = vmatpush3.bf16.msra.mxu1 %v1965_v56 }
 0x3c9   :  { %1543 = vmatprep.subr.bf16.mxu1 %v1975_v59 }
 0x3cc   :  { %1545 = vmatpush3.bf16.msra.mxu1 %v1975_v59 }
 0x3cd   :  { %1547 = vmatprep.subr.bf16.mxu1 %v1985_v63 }
 0x3d0   :  { %1549 = vmatpush3.bf16.msra.mxu1 %v1985_v63 }
 0x496   :  { %v1390_v15 = vpop.f32.mrb[6].mxu1 }
 0x497   :  { %v1001_v23 = vadd.f32 %v1390_v15, %v1944_v40  ;;  %v995_v16 = vpop.f32.mrb[7].mxu1 }
 0x498   :  { %v996_v25 = vadd.f32 %v995_v16, %v1944_v40 }
 0x499   :  { %v1007_v53 = vadd.f32 %v2003_v10, %v1001_v23 }
 0x49a   :  { %v1006_v26 = vadd.f32 %v996_v25, %v2007_v13 }
 0x49b   :  { %v1009_v28 = vmul.f32 %v1007_v53, %v1007_v53 }
 0x49c   :  { %v1008_v56 = vmul.f32 %v1006_v26, %v1006_v26 }
 0x49d   :  { %v1011_v30 = vmul.f32 %v1009_v28, %v1007_v53 }
 0x49e   :  { %v1010_v31 = vmul.f32 %v1008_v56, %v1006_v26 }
 0x49f   :  { %v1013_v44 = vmul.f32 0.044715, %v1011_v30 }
 0x4a0   :  { %v1012_v59 = vmul.f32 0.044715, %v1010_v31 }
 0x4a1   :  { %v1015_v45 = vadd.f32 %v1013_v44, %v1007_v53 }
 0x4a2   :  { %v1014_v46 = vadd.f32 %v1012_v59, %v1006_v26 }
 0x4a3   :  { %v1017_v27 = vmul.f32 0.7978846, %v1015_v45 }
 0x4a4   :  { %v1016_v63 = vmul.f32 0.7978846, %v1014_v46 }
 0x4a5   :  { %1602 = vtanh.f32 %v1017_v27 }
 0x4a6   :  { %1604 = vtanh.f32 %v1016_v63 }
 0x4af   :  { %v1603_v47 = vpop.eup %1602 }
 0x4b0   :  { %v1605_v48 = vpop.eup %1604  ;;  %v1021_v18 = vadd.f32 1.0, %v1603_v47 }
 0x4b1   :  { %v1020_v40 = vadd.f32 1.0, %v1605_v48 }
 0x4b2   :  { %v1023_v29 = vmul.f32 0.5, %v1021_v18 }
 0x4b3   :  { %v1022_v10 = vmul.f32 0.5, %v1020_v40 }
 0x4b4   :  { %v1025_v13 = vmul.f32 %v1023_v29, %v1007_v53 }
 0x4b5   :  { %v1024_v49 = vmul.f32 %v1022_v10, %v1006_v26 }
 0x4b7   :  { %1407 = vmatprep.mubr.msk.f32.mxu1 %vm50_vm0, %v1024_v49 }
 0x4b8   :  { %1408 = vmatmul.mubr.msk.f32.vlgmr.msra.gmra.mrb[12].mxu1 %vm50_vm0, %v1025_v13 }
 0x58b   :  { %v1409_v50 = vpop.f32.mrb[12].mxu1 }
 0x58c   :  { %v1104_v51 = vadd.f32 %v1409_v50, %v2034_v36  ;;  %v1098_v21 = vpop.f32.mrb[13].mxu1 }
 0x58d   :  { %v1099_v52 = vadd.f32 %v1098_v21, %v2034_v36 }
 0x58e   :  { %v1150_v54 = vmul.f32 %v2031_v34, %v1104_v51 }
 0x58f   :  { %v1149_v57 = vmul.f32 %v2026_v4, %v1099_v52 }
 0x590   :  { %v1152_v60 = vadd.f32 %v1150_v54, %v1140_v55 }
 0x591   :  { %v1151_v62 = vadd.f32 %v1149_v57, %v1139_v58 }
 0x592   :  { %1157 = vrot.lane.b32.xlu0 %v1152_v60, %s1617_s7 }
 0x593   :  { %1155 = vrot.lane.b32.xlu1 %v1151_v62, %s1617_s7 }
 0x604   :  { %v1158_v0 = vpop.permute.xlu0 %1157 }
 0x605   :  { %1163 = vst.msk [vmem:[%s2092_s4 + $0x8] sm:$0xff] %vm1161_vm2, %v1158_v0  ;;  %v1156_v36 = vpop.permute.xlu1 %1155 }
 0x606   :  { %1162 = vst.msk [vmem:[%s2092_s4] sm:$0xff] %vm1161_vm2, %v1156_v36 }

</bundles_post_ra>
